<compile_context>
chip_gen: v6e
topology: v6e:2x2x1
jax: 0.10.0
libtpu: 0.0.40
codegen_flags: <defaults>
</compile_context>

<pallas_src>
import functools

import jax
import jax.numpy as jnp
from jax.experimental import pallas as pl
from jax.experimental.pallas import tpu as pltpu

IN_FEATURES = 28
HIDDEN = 50
OUT_FEATURES = 20

HIDDEN_PAD = 128   # lane-dense hidden width (zero-padded columns are free)
OUT_PAD = 128      # lane-dense output width (avoids masked partial stores)


def mlp_kernel(x_ref, w0_ref, b0_ref, w1_ref, b1_ref, o_ref):
    # Hidden layer: (TB, 28) @ (28, 128) -> f32 accumulation on the MXU.
    h = jnp.dot(x_ref[...], w0_ref[...], preferred_element_type=jnp.float32)
    h = jnp.maximum(h + b0_ref[...], 0.0)          # bias + ReLU in f32 (VPU)
    # Output layer: (TB, 128) @ (128, 128) -> f32 accumulation.
    y = jnp.dot(h.astype(w1_ref.dtype), w1_ref[...],
                preferred_element_type=jnp.float32)
    o_ref[...] = (y + b1_ref[...]).astype(o_ref.dtype)


@functools.partial(jax.jit, static_argnames=("block_rows", "compute_dtype"))
def mlp_forward(x, w0, b0, w1, b1, *, block_rows=2048,
                compute_dtype=jnp.bfloat16):
    """y = relu(x @ w0 + b0) @ w1 + b1, weights stored as (in, out)."""
    B, in_f = x.shape
    hidden = w0.shape[1]
    out_f = w1.shape[1]

    # --- Pad weights / biases to lane-dense widths (zeros -> exact result) ---
    w0p = jnp.zeros((in_f, HIDDEN_PAD), compute_dtype)
    w0p = w0p.at[:, :hidden].set(w0.astype(compute_dtype))
    b0p = jnp.zeros((1, HIDDEN_PAD), jnp.float32)
    b0p = b0p.at[:, :hidden].set(b0.reshape(1, -1).astype(jnp.float32))
    w1p = jnp.zeros((HIDDEN_PAD, OUT_PAD), compute_dtype)
    w1p = w1p.at[:hidden, :out_f].set(w1.astype(compute_dtype))
    b1p = jnp.zeros((1, OUT_PAD), jnp.float32)
    b1p = b1p.at[:, :out_f].set(b1.reshape(1, -1).astype(jnp.float32))

    xc = x.astype(compute_dtype)

    # --- Batch tiling: large row tiles amortize ~0.35us/step overhead, but
    # small enough that double-buffered x/y tiles stay far under v7x's 64 MiB
    # VMEM (2*TB*128*4 + 2*TB*28*2 + weights ~= 2.3 MiB at TB=2048). ---
    tb = B if B <= block_rows else block_rows
    grid = (pl.cdiv(B, tb),)

    out_padded = pl.pallas_call(
        mlp_kernel,
        out_shape=jax.ShapeDtypeStruct((B, OUT_PAD), jnp.float32),
        grid_spec=pl.GridSpec(
            grid=grid,
            in_specs=[
                pl.BlockSpec((tb, in_f), lambda i: (i, 0)),          # x: streamed
                pl.BlockSpec((in_f, HIDDEN_PAD), lambda i: (0, 0)),  # w0: resident
                pl.BlockSpec((1, HIDDEN_PAD), lambda i: (0, 0)),     # b0: resident
                pl.BlockSpec((HIDDEN_PAD, OUT_PAD), lambda i: (0, 0)),  # w1
                pl.BlockSpec((1, OUT_PAD), lambda i: (0, 0)),        # b1
            ],
            out_specs=pl.BlockSpec((tb, OUT_PAD), lambda i: (i, 0)),  # lane-dense
        ),
        compiler_params=pltpu.CompilerParams(
            # Parallel batch axis -> v7x megacore shards grid steps over 2 TCs.
            dimension_semantics=("parallel",),
            vmem_limit_bytes=64 << 20,
        ),
    )(xc, w0p, b0p, w1p, b1p)

    return out_padded[:, :out_f]


def init_params(key):
    # Mimic torch.nn.Linear default init: U(-1/sqrt(fan_in), 1/sqrt(fan_in)).
    # Weights stored transposed as (in, out) so the kernel computes x @ W,
    # matching PyTorch's x @ W_pt.T + b exactly.
    k0w, k0b, k1w, k1b = jax.random.split(key, 4)
    bound0 = 1.0 / jnp.sqrt(float(IN_FEATURES))
    bound1 = 1.0 / jnp.sqrt(float(HIDDEN))
    w0 = jax.random.uniform(k0w, (IN_FEATURES, HIDDEN), jnp.float32, -bound0, bound0)
    b0 = jax.random.uniform(k0b, (HIDDEN,), jnp.float32, -bound0, bound0)
    w1 = jax.random.uniform(k1w, (HIDDEN, OUT_FEATURES), jnp.float32, -bound1, bound1)
    b1 = jax.random.uniform(k1b, (OUT_FEATURES,), jnp.float32, -bound1, bound1)
    return w0, b0, w1, b1


if __name__ == "__main__":
    key = jax.random.PRNGKey(0)
    kx, kp = jax.random.split(key)
    batch = 8
    x = jax.random.normal(kx, (batch, IN_FEATURES), jnp.float32)
    w0, b0, w1, b1 = init_params(kp)

    ref = jnp.maximum(x @ w0 + b0[None, :], 0.0) @ w1 + b1[None, :]

    # Exact-semantics path (f32 matmul inputs): tight tolerance.
    out_f32 = mlp_forward(x, w0, b0, w1, b1, compute_dtype=jnp.float32)
    out_f32 = jax.block_until_ready(out_f32)
    assert out_f32.shape == (batch, OUT_FEATURES)
    assert jnp.allclose(out_f32, ref, atol=1e-5, rtol=1e-5)

    # Fast path (bf16 matmul inputs, f32 accumulation): looser tolerance.
    out_bf16 = mlp_forward(x, w0, b0, w1, b1, compute_dtype=jnp.bfloat16)
    out_bf16 = jax.block_until_ready(out_bf16)
    assert out_bf16.shape == (batch, OUT_FEATURES)
    assert jnp.allclose(out_bf16, ref, atol=2e-2, rtol=2e-2)

    print("KERNEL_OK")
</pallas_src>

<mosaic_0001>
module attributes {stable_mosaic.version = 11 : i64} {
  func.func @mlp_kernel(%arg0: i32, %arg1: memref<8x28xf32, #tpu.memory_space<vmem>>, %arg2: memref<28x128xf32, #tpu.memory_space<vmem>>, %arg3: memref<1x128xf32, #tpu.memory_space<vmem>>, %arg4: memref<128x128xf32, #tpu.memory_space<vmem>>, %arg5: memref<1x128xf32, #tpu.memory_space<vmem>>, %arg6: memref<8x128xf32, #tpu.memory_space<vmem>>) attributes {dimension_semantics = [#tpu.dimension_semantics<parallel>], iteration_bounds = array<i64: 1>, scalar_prefetch = 0 : i64, scratch_operands = 0 : i64, tpu.core_type = #tpu.core_type<tc>, window_params = [{transform_indices = @transform_0, window_bounds = array<i64: 8, 28>}, {pipeline_mode = #tpu.pipeline_mode<synchronous>, transform_indices = @transform_1, window_bounds = array<i64: 28, 128>}, {pipeline_mode = #tpu.pipeline_mode<synchronous>, transform_indices = @transform_2, window_bounds = array<i64: 1, 128>}, {pipeline_mode = #tpu.pipeline_mode<synchronous>, transform_indices = @transform_3, window_bounds = array<i64: 128, 128>}, {pipeline_mode = #tpu.pipeline_mode<synchronous>, transform_indices = @transform_4, window_bounds = array<i64: 1, 128>}, {transform_indices = @transform_5, window_bounds = array<i64: 8, 128>}]} {
    %c0 = arith.constant 0 : index
    %c0_0 = arith.constant 0 : index
    %0 = vector.load %arg1[%c0, %c0_0] : memref<8x28xf32, #tpu.memory_space<vmem>>, vector<8x28xf32>
    %c0_1 = arith.constant 0 : index
    %c0_2 = arith.constant 0 : index
    %1 = vector.load %arg2[%c0_1, %c0_2] : memref<28x128xf32, #tpu.memory_space<vmem>>, vector<28x128xf32>
    %cst = arith.constant dense<0.000000e+00> : vector<8x128xf32>
    %2 = tpu.matmul %0, %1, %cst {dimension_numbers = #tpu.dot_dimension_numbers<[1], [0], [0], [1], [0, 0, 1, 1], [], []>} : vector<8x28xf32>, vector<28x128xf32>, vector<8x128xf32> -> vector<8x128xf32>
    %c0_3 = arith.constant 0 : index
    %c0_4 = arith.constant 0 : index
    %3 = vector.load %arg3[%c0_3, %c0_4] : memref<1x128xf32, #tpu.memory_space<vmem>>, vector<1x128xf32>
    %4 = vector.broadcast %3 : vector<1x128xf32> to vector<8x128xf32>
    %5 = arith.addf %2, %4 : vector<8x128xf32>
    %cst_5 = arith.constant 0.000000e+00 : f32
    %6 = vector.broadcast %cst_5 : f32 to vector<8x128xf32>
    %7 = arith.maximumf %5, %6 : vector<8x128xf32>
    %c0_6 = arith.constant 0 : index
    %c0_7 = arith.constant 0 : index
    %8 = vector.load %arg4[%c0_6, %c0_7] : memref<128x128xf32, #tpu.memory_space<vmem>>, vector<128x128xf32>
    %cst_8 = arith.constant dense<0.000000e+00> : vector<8x128xf32>
    %9 = tpu.matmul %7, %8, %cst_8 {dimension_numbers = #tpu.dot_dimension_numbers<[1], [0], [0], [1], [0, 0, 1, 1], [], []>} : vector<8x128xf32>, vector<128x128xf32>, vector<8x128xf32> -> vector<8x128xf32>
    %c0_9 = arith.constant 0 : index
    %c0_10 = arith.constant 0 : index
    %10 = vector.load %arg5[%c0_9, %c0_10] : memref<1x128xf32, #tpu.memory_space<vmem>>, vector<1x128xf32>
    %11 = vector.broadcast %10 : vector<1x128xf32> to vector<8x128xf32>
    %12 = arith.addf %9, %11 : vector<8x128xf32>
    %c0_11 = arith.constant 0 : index
    %c0_12 = arith.constant 0 : index
    %13 = vector.load %arg6[%c0_11, %c0_12] : memref<8x128xf32, #tpu.memory_space<vmem>>, vector<8x128xf32>
    tpu.vector_store %arg6[%c0_11, %c0_12], %12 {strides = array<i32>} : memref<8x128xf32, #tpu.memory_space<vmem>>, vector<8x128xf32>,
    return
  }
  func.func @transform_0(%arg0: i32) -> (i32, i32) {
    %c0_i32 = arith.constant 0 : i32
    %c0_i32_0 = arith.constant 0 : i32
    return %arg0, %c0_i32 : i32, i32
  }
  func.func @transform_1(%arg0: i32) -> (i32, i32) {
    %c0_i32 = arith.constant 0 : i32
    %c0_i32_0 = arith.constant 0 : i32
    %c0_i32_1 = arith.constant 0 : i32
    return %c0_i32, %c0_i32_0 : i32, i32
  }
  func.func @transform_2(%arg0: i32) -> (i32, i32) {
    %c0_i32 = arith.constant 0 : i32
    %c0_i32_0 = arith.constant 0 : i32
    %c0_i32_1 = arith.constant 0 : i32
    return %c0_i32, %c0_i32_0 : i32, i32
  }
  func.func @transform_3(%arg0: i32) -> (i32, i32) {
    %c0_i32 = arith.constant 0 : i32
    %c0_i32_0 = arith.constant 0 : i32
    %c0_i32_1 = arith.constant 0 : i32
    return %c0_i32, %c0_i32_0 : i32, i32
  }
  func.func @transform_4(%arg0: i32) -> (i32, i32) {
    %c0_i32 = arith.constant 0 : i32
    %c0_i32_0 = arith.constant 0 : i32
    %c0_i32_1 = arith.constant 0 : i32
    return %c0_i32, %c0_i32_0 : i32, i32
  }
  func.func @transform_5(%arg0: i32) -> (i32, i32) {
    %c0_i32 = arith.constant 0 : i32
    %c0_i32_0 = arith.constant 0 : i32
    return %arg0, %c0_i32 : i32, i32
  }
}

</mosaic_0001>

<bundles_post_ra>
// kernel: mlp_forward.1
= control target key start
LH: loop header
LB: loop body
LE: loop exit
PB: predicated region body
PF: predicated region fallthrough
CT: control target
= control target key end

     0   :  { %vm37_vm0 = vcmask 1043456   ;;  %v317_v1 = vmov 0.0   ;;  %vm318_vm1 = vmmov 0   ;;  %vm33_vm2 = vcmask 228352   ;;  %s446_s0 = inlined_call_operand.vmem [shape: f32[8,28], index: 0, kind: input, shape index: {}]   ;;  %s447_s1 = inlined_call_operand.vmem [shape: f32[28,128], index: 1, kind: input, shape index: {}]   ;;  %s448_s2 = inlined_call_operand.vmem [shape: f32[1,128], index: 2, kind: input, shape index: {}]   ;;  %s449_s3 = inlined_call_operand.vmem [shape: f32[128,128], index: 3, kind: input, shape index: {}]   ;;  %s450_s4 = inlined_call_operand.vmem [shape: f32[1,128], index: 4, kind: input, shape index: {}]   ;;  %s451_s5 = inlined_call_operand.hbm [shape: f32[8,128], index: 5, kind: output, shape index: {}]  }
   0x1   :  { %v25_v0 = vld [vmem:[%s447_s1 + $0x18] sm:$0xf]  ;;  %246 = vmatprep.subr.mxu0 %v317_v1  ;;  %v24_v2 = vld [vmem:[%s447_s1 + $0x10] sm:$0xff]  ;;  %257 = vmatprep.subr.mxu1 %v317_v1  ;;  %v23_v5 = vld [vmem:[%s447_s1 + $0x8] sm:$0xff] }
   0x2   :  { %v127_v3 = vld [vmem:[%s449_s3 + $0x78] sm:$0xff]  ;;  %247 = vmatpush3.msk.msra.mxu0 %vm37_vm0, %v25_v0  ;;  %254 = vmatprep.mubr.msk.f32.mxu0 %vm318_vm1, %v317_v1  ;;  %v126_v4 = vld [vmem:[%s449_s3 + $0x70] sm:$0xff]  ;;  %v125_v6 = vld [vmem:[%s449_s3 + $0x68] sm:$0xff] }
   0x3   :  { %248 = vmatprep.subr.mxu0 %v317_v1  ;;  %258 = vmatpush3.msra.mxu1 %v127_v3  ;;  %v22_v7 = vld [vmem:[%s447_s1] sm:$0xff] }
   0x4   :  { %249 = vmatpush3.msra.mxu0 %v24_v2  ;;  %259 = vmatprep.subr.mxu1 %v317_v1  ;;  %v21_v8 = vld [vmem:[%s446_s0] sm:$0xff] }
   0x5   :  { %250 = vmatprep.subr.mxu0 %v317_v1  ;;  %260 = vmatpush3.msra.mxu1 %v126_v4  ;;  %v124_v9 = vld [vmem:[%s449_s3 + $0x60] sm:$0xff] }
   0x6   :  { %251 = vmatpush3.msra.mxu0 %v23_v5  ;;  %261 = vmatprep.subr.mxu1 %v317_v1 }
   0x7   :  { %10 = vsyncpa [#allocation3], 0  ;;  %252 = vmatprep.subr.mxu0 %v317_v1  ;;  %262 = vmatpush3.msra.mxu1 %v125_v6  ;;  %v123_v10 = vld [vmem:[%s449_s3 + $0x58] sm:$0xff]  ;;  %v122_v11 = vld [vmem:[%s449_s3 + $0x50] sm:$0xff]  ;;  %s319_s11 = smov [#allocation2]  }
   0x8   :  { %253 = vmatpush3.msra.mxu0 %v22_v7  ;;  %263 = vmatprep.subr.mxu1 %v317_v1  ;;  %v121_v12 = vld [vmem:[%s449_s3 + $0x48] sm:$0xff]  ;;  %v120_v13 = vld [vmem:[%s449_s3 + $0x40] sm:$0xff]  ;;  %v119_v14 = vld [vmem:[%s449_s3 + $0x38] sm:$0xff]  ;;  %s212_s0 = sshll.u32 %s319_s11, 4  ;;  %s213_s0 = int_to_ptr.vmem [resolvable:$true] %s212_s0 }
   0x9   :  { %255 = vmatmul.mubr.msk.f32.vlgmr.msra.gmra.mxu0 %vm33_vm2, %v21_v8  ;;  %264 = vmatpush3.msra.mxu1 %v124_v9  ;;  %v118_v15 = vld [vmem:[%s449_s3 + $0x30] sm:$0xff]  ;;  %v117_v16 = vld [vmem:[%s449_s3 + $0x28] sm:$0xff]  ;;  %v116_v17 = vld [vmem:[%s449_s3 + $0x20] sm:$0xff]  ;;  %p300_p1 = scmp.lt.s32.totalorder %s213_s0, %s213_s0 }
   0xa   :  { %265 = vmatprep.subr.mxu1 %v317_v1  ;;  %289 = vmatprep.mubr.msk.f32.mxu1 %vm318_vm1, %v317_v1  ;;  %v115_v18 = vld [vmem:[%s449_s3 + $0x18] sm:$0xff]  ;;  %v114_v19 = vld [vmem:[%s449_s3 + $0x10] sm:$0xff]  ;;  %v113_v20 = vld [vmem:[%s449_s3 + $0x8] sm:$0xff] }
   0xb   :  { %266 = vmatpush3.msra.mxu1 %v123_v10  ;;  %v112_v21 = vld [vmem:[%s449_s3] sm:$0xff]  ;;  %s295_s3 = scalar_lea.vmem %s213_s0, 128 }
   0xc   :  { %267 = vmatprep.subr.mxu1 %v317_v1  ;;  %v220_v22 = vld [vmem:[%s448_s2] ss:$0 sm:$0xff]  ;;  %p296_p0 = scmp.ne.s32.totalorder %s213_s0, %s295_s3  ;;  %p301_p2 = scmp.lt.s32.totalorder %s295_s3, %s295_s3 }
   0xd   :  { %268 = vmatpush3.msra.mxu1 %v122_v11  ;;  %v223_v27 = vld [vmem:[%s450_s4] ss:$0 sm:$0xff] }
   0xe   :  { %269 = vmatprep.subr.mxu1 %v317_v1  ;;  %p302_p3 = por %p301_p2, %p300_p1 }
   0xf   :  { %270 = vmatpush3.msra.mxu1 %v121_v12 }
  0x10   :  { %271 = vmatprep.subr.mxu1 %v317_v1  ;;  %p303_p4 = pnand %p302_p3, %p296_p0 }
  0x11   :  { %272 = vmatpush3.msra.mxu1 %v120_v13 }
  0x12   :  { %273 = vmatprep.subr.mxu1 %v317_v1 }
  0x13   :  { %274 = vmatpush3.msra.mxu1 %v119_v14 }
  0x14   :  { %275 = vmatprep.subr.mxu1 %v317_v1 }
  0x15   :  { %276 = vmatpush3.msra.mxu1 %v118_v15 }
  0x16   :  { %277 = vmatprep.subr.mxu1 %v317_v1 }
  0x17   :  { %278 = vmatpush3.msra.mxu1 %v117_v16 }
  0x18   :  { %279 = vmatprep.subr.mxu1 %v317_v1 }
  0x19   :  { %280 = vmatpush3.msra.mxu1 %v116_v17 }
  0x1a   :  { %281 = vmatprep.subr.mxu1 %v317_v1 }
  0x1b   :  { %282 = vmatpush3.msra.mxu1 %v115_v18 }
  0x1c   :  { %283 = vmatprep.subr.mxu1 %v317_v1 }
  0x1d   :  { %284 = vmatpush3.msra.mxu1 %v114_v19 }
  0x1e   :  { %285 = vmatprep.subr.mxu1 %v317_v1 }
  0x1f   :  { %286 = vmatpush3.msra.mxu1 %v113_v20 }
  0x20   :  { %287 = vmatprep.subr.mxu1 %v317_v1 }
  0x21   :  { %288 = vmatpush3.msra.mxu1 %v112_v21 }
  0xc9   :  { %v107_v23 = vpop.f32.mrf.mxu0 }
  0xca   :  { %v108_v24 = vadd.f32 %v220_v22, %v107_v23 }
  0xcb   :  { %v256_v25 = vpop.f32.mrf.mxu0 }
  0xcc   :  { %v111_v26 = vmax.f32 %v108_v24, 0.0 }
  0xce   :  { %290 = vmatmul.mubr.f32.vlgmr.msra.gmra.mxu1 %v111_v26 }
 0x18e   :  { %v201_v28 = vpop.f32.mrf.mxu1 }
 0x18f   :  { %v202_v29 = vadd.f32 %v223_v27, %v201_v28 }
 0x190   :  { %v291_v30 = vpop.f32.mrf.mxu1 }
 0x191   :  { %205 = vst [vmem:[#allocation2] sm:$0xff] %v202_v29 }
 0x192   :  { %306 = shalt.err (!%p303_p4)
}
 0x193   :  { %215 = dma.vmem_to_hbm [thread:$0]  %s213_s0, 128, %s451_s5, [#allocation3]  }
 0x194   :  { %315 = dma.done.wait [#allocation3], 128  }
 0x195   :  { %316 = vsyncadd [#allocation3], 4294967168 }
 0x196   :  { %219 = vsyncpa [#allocation3], 1 }

</bundles_post_ra>
